<compile_context>
chip_gen: v5e
topology: v5e:2x2
jax: 0.10.0
libtpu: 0.0.40
codegen_flags: <defaults>
</compile_context>

<pallas_src>
import functools

import jax
import jax.numpy as jnp
from jax.experimental import pallas as pl
from jax.experimental.pallas import tpu as pltpu


def _round_up(x, m):
    return (x + m - 1) // m * m


def generator_kernel(x_ref, w1_ref, b1_ref, w2_ref, b2_ref, w3_ref, b3_ref,
                     o_ref):
    # x_ref: (TM, Kp) bf16 ; weights bf16 ; biases f32 ; o_ref: (TM, Np) f32
    x = x_ref[...]

    h1 = jnp.dot(x, w1_ref[...], preferred_element_type=jnp.float32) + b1_ref[...]
    h1 = jnp.maximum(h1, 0.0).astype(jnp.bfloat16)

    h2 = jnp.dot(h1, w2_ref[...], preferred_element_type=jnp.float32) + b2_ref[...]
    h2 = jnp.maximum(h2, 0.0).astype(jnp.bfloat16)

    h3 = jnp.dot(h2, w3_ref[...], preferred_element_type=jnp.float32) + b3_ref[...]
    o_ref[...] = jnp.maximum(h3, 0.0)


def _generator_forward_impl(z, label, params, *, tm=None):
    B, z_dim = z.shape
    reflect = label.shape[1]
    K = z_dim + reflect
    hidden = params["w2"].shape[0]
    n_size = params["w3"].shape[1]

    k_pad = _round_up(K, 128)                 # 190 -> 256 (single lane-dense K)
    n_pad = _round_up(n_size, 128)            # 5   -> 128 (lane-dense output)

    # Batch tile: multiple of 16 (bf16 sublane packing), capped at 256 (fills
    # the MXU M dim on v6e/v7x, small enough for v7x's 64 MiB VMEM by a mile).
    if tm is None:
        tm = min(256, _round_up(B, 16))
    b_pad = _round_up(B, tm)

    # --- wrapper-side layout plumbing (all constant-foldable under jit) -----
    x = jnp.concatenate([z, label], axis=1)
    x = jnp.pad(x, ((0, b_pad - B), (0, k_pad - K))).astype(jnp.bfloat16)

    w1 = jnp.concatenate([params["w1a"], params["w1b"]], axis=0)
    w1 = jnp.pad(w1, ((0, k_pad - K), (0, 0))).astype(jnp.bfloat16)
    b1 = params["b1"].astype(jnp.float32)
    w2 = params["w2"].astype(jnp.bfloat16)
    b2 = params["b2"].astype(jnp.float32)
    w3 = jnp.pad(params["w3"], ((0, 0), (0, n_pad - n_size))).astype(jnp.bfloat16)
    b3 = jnp.pad(params["b3"], ((0, 0), (0, n_pad - n_size))).astype(jnp.float32)

    grid = (b_pad // tm,)

    flops = 2 * b_pad * (k_pad * hidden + hidden * hidden + hidden * n_pad)
    bytes_accessed = (x.size * 2 + w1.size * 2 + w2.size * 2 + w3.size * 2 +
                      (b1.size + b2.size + b3.size) * 4 + b_pad * n_pad * 4)

    out = pl.pallas_call(
        generator_kernel,
        out_shape=jax.ShapeDtypeStruct((b_pad, n_pad), jnp.float32),
        grid_spec=pltpu.PrefetchScalarGridSpec(
            num_scalar_prefetch=0,
            grid=grid,
            in_specs=[
                pl.BlockSpec((tm, k_pad), lambda i: (i, 0)),       # x: tiled on B
                pl.BlockSpec((k_pad, hidden), lambda i: (0, 0)),   # W1: resident
                pl.BlockSpec((1, hidden), lambda i: (0, 0)),       # b1
                pl.BlockSpec((hidden, hidden), lambda i: (0, 0)),  # W2
                pl.BlockSpec((1, hidden), lambda i: (0, 0)),       # b2
                pl.BlockSpec((hidden, n_pad), lambda i: (0, 0)),   # W3
                pl.BlockSpec((1, n_pad), lambda i: (0, 0)),        # b3
            ],
            out_specs=pl.BlockSpec((tm, n_pad), lambda i: (i, 0)),
        ),
        compiler_params=pltpu.CompilerParams(
            dimension_semantics=("parallel",),
            vmem_limit_bytes=32 * 1024 * 1024,
        ),
        cost_estimate=pl.CostEstimate(
            flops=flops, transcendentals=0, bytes_accessed=bytes_accessed),
    )(x, w1, b1, w2, b2, w3, b3)

    return out[:B, :n_size]


generator_forward = jax.jit(_generator_forward_impl, static_argnames=("tm",))


def init_params(key, z_dim=100, reflect_size=90, hidden=256, n_size=5):
    # Synthetic deterministic init (mimics utils.initialize_weights: normal
    # weights, zero biases).  Weights stored [in, out] so y = x @ W + b.
    k1, k2, k3 = jax.random.split(key, 3)
    w1 = jax.random.normal(k1, (z_dim + reflect_size, hidden), jnp.float32) * 0.02
    w2 = jax.random.normal(k2, (hidden, hidden), jnp.float32) * 0.02
    w3 = jax.random.normal(k3, (hidden, n_size), jnp.float32) * 0.02
    return {
        "w1a": w1[:z_dim],
        "w1b": w1[z_dim:],
        "b1": jnp.zeros((1, hidden), jnp.float32),
        "w2": w2,
        "b2": jnp.zeros((1, hidden), jnp.float32),
        "w3": w3,
        "b3": jnp.zeros((1, n_size), jnp.float32),
    }


def reference_forward_f32(z, label, params):
    x = jnp.concatenate([z, label], axis=1)
    w1 = jnp.concatenate([params["w1a"], params["w1b"]], axis=0)
    h = jnp.maximum(x @ w1 + params["b1"], 0.0)
    h = jnp.maximum(h @ params["w2"] + params["b2"], 0.0)
    return jnp.maximum(h @ params["w3"] + params["b3"], 0.0)


def reference_forward_bf16(z, label, params):
    # Mirrors the kernel's numerics: bf16 matmul inputs, f32 accumulation.
    x = jnp.concatenate([z, label], axis=1).astype(jnp.bfloat16)
    w1 = jnp.concatenate([params["w1a"], params["w1b"]],
                         axis=0).astype(jnp.bfloat16)
    h = jnp.maximum(jnp.dot(x, w1, preferred_element_type=jnp.float32)
                    + params["b1"], 0.0).astype(jnp.bfloat16)
    h = jnp.maximum(jnp.dot(h, params["w2"].astype(jnp.bfloat16),
                            preferred_element_type=jnp.float32)
                    + params["b2"], 0.0).astype(jnp.bfloat16)
    return jnp.maximum(jnp.dot(h, params["w3"].astype(jnp.bfloat16),
                               preferred_element_type=jnp.float32)
                       + params["b3"], 0.0)


if __name__ == "__main__":
    Z_DIM, REFLECT, N_SIZE, BATCH = 100, 90, 5, 4

    key = jax.random.PRNGKey(0)
    kp, kz, kl = jax.random.split(key, 3)

    params = init_params(kp, z_dim=Z_DIM, reflect_size=REFLECT, n_size=N_SIZE)
    z = jax.random.normal(kz, (BATCH, Z_DIM), jnp.float32)
    label = jax.random.normal(kl, (BATCH, REFLECT), jnp.float32)

    out = generator_forward(z, label, params)
    out = jax.block_until_ready(out)

    assert out.shape == (BATCH, N_SIZE), out.shape

    ref_bf16 = reference_forward_bf16(z, label, params)
    assert jnp.allclose(out, ref_bf16, atol=1e-3, rtol=1e-3), \
        "mismatch vs bf16-matched reference"

    ref_f32 = reference_forward_f32(z, label, params)
    assert jnp.allclose(out, ref_f32, atol=5e-2, rtol=5e-2), \
        "mismatch vs f32 reference"

    print("KERNEL_OK")
</pallas_src>

<mosaic_0001>
module attributes {stable_mosaic.version = 11 : i64} {
  func.func @generator_kernel(%arg0: i32, %arg1: memref<16x256xbf16, #tpu.memory_space<vmem>>, %arg2: memref<256x256xbf16, #tpu.memory_space<vmem>>, %arg3: memref<1x256xf32, #tpu.memory_space<vmem>>, %arg4: memref<256x256xbf16, #tpu.memory_space<vmem>>, %arg5: memref<1x256xf32, #tpu.memory_space<vmem>>, %arg6: memref<256x128xbf16, #tpu.memory_space<vmem>>, %arg7: memref<1x128xf32, #tpu.memory_space<vmem>>, %arg8: memref<16x128xf32, #tpu.memory_space<vmem>>) attributes {dimension_semantics = [#tpu.dimension_semantics<parallel>], iteration_bounds = array<i64: 1>, scalar_prefetch = 0 : i64, scratch_operands = 0 : i64, tpu.core_type = #tpu.core_type<tc>, window_params = [{transform_indices = @transform_0, window_bounds = array<i64: 16, 256>}, {pipeline_mode = #tpu.pipeline_mode<synchronous>, transform_indices = @transform_1, window_bounds = array<i64: 256, 256>}, {pipeline_mode = #tpu.pipeline_mode<synchronous>, transform_indices = @transform_2, window_bounds = array<i64: 1, 256>}, {pipeline_mode = #tpu.pipeline_mode<synchronous>, transform_indices = @transform_3, window_bounds = array<i64: 256, 256>}, {pipeline_mode = #tpu.pipeline_mode<synchronous>, transform_indices = @transform_4, window_bounds = array<i64: 1, 256>}, {pipeline_mode = #tpu.pipeline_mode<synchronous>, transform_indices = @transform_5, window_bounds = array<i64: 256, 128>}, {pipeline_mode = #tpu.pipeline_mode<synchronous>, transform_indices = @transform_6, window_bounds = array<i64: 1, 128>}, {transform_indices = @transform_7, window_bounds = array<i64: 16, 128>}]} {
    %c0 = arith.constant 0 : index
    %c0_0 = arith.constant 0 : index
    %0 = vector.load %arg1[%c0, %c0_0] : memref<16x256xbf16, #tpu.memory_space<vmem>>, vector<16x256xbf16>
    %c0_1 = arith.constant 0 : index
    %c0_2 = arith.constant 0 : index
    %1 = vector.load %arg2[%c0_1, %c0_2] : memref<256x256xbf16, #tpu.memory_space<vmem>>, vector<256x256xbf16>
    %cst = arith.constant dense<0.000000e+00> : vector<16x256xf32>
    %2 = tpu.matmul %0, %1, %cst {dimension_numbers = #tpu.dot_dimension_numbers<[1], [0], [0], [1], [0, 0, 1, 1], [], []>} : vector<16x256xbf16>, vector<256x256xbf16>, vector<16x256xf32> -> vector<16x256xf32>
    %c0_3 = arith.constant 0 : index
    %c0_4 = arith.constant 0 : index
    %3 = vector.load %arg3[%c0_3, %c0_4] : memref<1x256xf32, #tpu.memory_space<vmem>>, vector<1x256xf32>
    %4 = vector.broadcast %3 : vector<1x256xf32> to vector<16x256xf32>
    %5 = arith.addf %2, %4 : vector<16x256xf32>
    %cst_5 = arith.constant 0.000000e+00 : f32
    %6 = vector.broadcast %cst_5 : f32 to vector<16x256xf32>
    %7 = arith.maximumf %5, %6 : vector<16x256xf32>
    %8 = arith.truncf %7 : vector<16x256xf32> to vector<16x256xbf16>
    %c0_6 = arith.constant 0 : index
    %c0_7 = arith.constant 0 : index
    %9 = vector.load %arg4[%c0_6, %c0_7] : memref<256x256xbf16, #tpu.memory_space<vmem>>, vector<256x256xbf16>
    %cst_8 = arith.constant dense<0.000000e+00> : vector<16x256xf32>
    %10 = tpu.matmul %8, %9, %cst_8 {dimension_numbers = #tpu.dot_dimension_numbers<[1], [0], [0], [1], [0, 0, 1, 1], [], []>} : vector<16x256xbf16>, vector<256x256xbf16>, vector<16x256xf32> -> vector<16x256xf32>
    %c0_9 = arith.constant 0 : index
    %c0_10 = arith.constant 0 : index
    %11 = vector.load %arg5[%c0_9, %c0_10] : memref<1x256xf32, #tpu.memory_space<vmem>>, vector<1x256xf32>
    %12 = vector.broadcast %11 : vector<1x256xf32> to vector<16x256xf32>
    %13 = arith.addf %10, %12 : vector<16x256xf32>
    %cst_11 = arith.constant 0.000000e+00 : f32
    %14 = vector.broadcast %cst_11 : f32 to vector<16x256xf32>
    %15 = arith.maximumf %13, %14 : vector<16x256xf32>
    %16 = arith.truncf %15 : vector<16x256xf32> to vector<16x256xbf16>
    %c0_12 = arith.constant 0 : index
    %c0_13 = arith.constant 0 : index
    %17 = vector.load %arg6[%c0_12, %c0_13] : memref<256x128xbf16, #tpu.memory_space<vmem>>, vector<256x128xbf16>
    %cst_14 = arith.constant dense<0.000000e+00> : vector<16x128xf32>
    %18 = tpu.matmul %16, %17, %cst_14 {dimension_numbers = #tpu.dot_dimension_numbers<[1], [0], [0], [1], [0, 0, 1, 1], [], []>} : vector<16x256xbf16>, vector<256x128xbf16>, vector<16x128xf32> -> vector<16x128xf32>
    %c0_15 = arith.constant 0 : index
    %c0_16 = arith.constant 0 : index
    %19 = vector.load %arg7[%c0_15, %c0_16] : memref<1x128xf32, #tpu.memory_space<vmem>>, vector<1x128xf32>
    %20 = vector.broadcast %19 : vector<1x128xf32> to vector<16x128xf32>
    %21 = arith.addf %18, %20 : vector<16x128xf32>
    %cst_17 = arith.constant 0.000000e+00 : f32
    %22 = vector.broadcast %cst_17 : f32 to vector<16x128xf32>
    %23 = arith.maximumf %21, %22 : vector<16x128xf32>
    %c0_18 = arith.constant 0 : index
    %c0_19 = arith.constant 0 : index
    %24 = vector.load %arg8[%c0_18, %c0_19] : memref<16x128xf32, #tpu.memory_space<vmem>>, vector<16x128xf32>
    tpu.vector_store %arg8[%c0_18, %c0_19], %23 {strides = array<i32>} : memref<16x128xf32, #tpu.memory_space<vmem>>, vector<16x128xf32>,
    return
  }
  func.func @transform_0(%arg0: i32) -> (i32, i32) {
    %c0_i32 = arith.constant 0 : i32
    %c0_i32_0 = arith.constant 0 : i32
    return %arg0, %c0_i32 : i32, i32
  }
  func.func @transform_1(%arg0: i32) -> (i32, i32) {
    %c0_i32 = arith.constant 0 : i32
    %c0_i32_0 = arith.constant 0 : i32
    %c0_i32_1 = arith.constant 0 : i32
    return %c0_i32, %c0_i32_0 : i32, i32
  }
  func.func @transform_2(%arg0: i32) -> (i32, i32) {
    %c0_i32 = arith.constant 0 : i32
    %c0_i32_0 = arith.constant 0 : i32
    %c0_i32_1 = arith.constant 0 : i32
    return %c0_i32, %c0_i32_0 : i32, i32
  }
  func.func @transform_3(%arg0: i32) -> (i32, i32) {
    %c0_i32 = arith.constant 0 : i32
    %c0_i32_0 = arith.constant 0 : i32
    %c0_i32_1 = arith.constant 0 : i32
    return %c0_i32, %c0_i32_0 : i32, i32
  }
  func.func @transform_4(%arg0: i32) -> (i32, i32) {
    %c0_i32 = arith.constant 0 : i32
    %c0_i32_0 = arith.constant 0 : i32
    %c0_i32_1 = arith.constant 0 : i32
    return %c0_i32, %c0_i32_0 : i32, i32
  }
  func.func @transform_5(%arg0: i32) -> (i32, i32) {
    %c0_i32 = arith.constant 0 : i32
    %c0_i32_0 = arith.constant 0 : i32
    %c0_i32_1 = arith.constant 0 : i32
    return %c0_i32, %c0_i32_0 : i32, i32
  }
  func.func @transform_6(%arg0: i32) -> (i32, i32) {
    %c0_i32 = arith.constant 0 : i32
    %c0_i32_0 = arith.constant 0 : i32
    %c0_i32_1 = arith.constant 0 : i32
    return %c0_i32, %c0_i32_0 : i32, i32
  }
  func.func @transform_7(%arg0: i32) -> (i32, i32) {
    %c0_i32 = arith.constant 0 : i32
    %c0_i32_0 = arith.constant 0 : i32
    return %arg0, %c0_i32 : i32, i32
  }
}

</mosaic_0001>

<bundles_post_ra>
// kernel: _generator_forward_impl.1
= control target key start
LH: loop header
LB: loop body
LE: loop exit
PB: predicated region body
PF: predicated region fallthrough
CT: control target
= control target key end

     0   :  { %s1636_s1 = inlined_call_operand.vmem [shape: bf16[256,256], index: 1, kind: input, shape index: {}]   ;;  %s1637_s0 = inlined_call_operand.vmem [shape: bf16[16,256], index: 0, kind: input, shape index: {}]   ;;  %s1638_s3 = inlined_call_operand.vmem [shape: bf16[256,256], index: 3, kind: input, shape index: {}]   ;;  %s1639_s5 = inlined_call_operand.vmem [shape: bf16[256,128], index: 5, kind: input, shape index: {}]   ;;  %s1640_s2 = inlined_call_operand.vmem [shape: f32[1,256], index: 2, kind: input, shape index: {}]   ;;  %s1641_s6 = inlined_call_operand.vmem [shape: f32[1,128], index: 6, kind: input, shape index: {}]   ;;  %s1642_s4 = inlined_call_operand.vmem [shape: f32[1,256], index: 4, kind: input, shape index: {}]   ;;  %s1643_s7 = inlined_call_operand.vmem [shape: f32[16,128], index: 7, kind: output, shape index: {}]  }
   0x1   :  { %v792_v0 = vld [vmem:[%s1636_s1 + $0x70] sm:$0xf]  ;;  %v1071_v1 = vld [vmem:[%s1636_s1 + $0x74] sm:$0xf0]  ;;  %v1070_v5 = vld [vmem:[%s1636_s1 + $0x74] sm:$0xf] }
   0x2   :  { %v856_v2 = vld [vmem:[%s1636_s1 + $0xf0] sm:$0xf]  ;;  %v793_v3 = vor.u32 %v1071_v1, %v792_v0  ;;  %v1087_v4 = vld [vmem:[%s1636_s1 + $0xf4] sm:$0xf0]  ;;  %v794_v6 = vld [vmem:[%s1636_s1 + $0x78] sm:$0xf0] }
   0x3   :  { %v857_v7 = vor.u32 %v1087_v4, %v856_v2  ;;  %v797_v8 = vor.u32 %v1070_v5, %v794_v6  ;;  %v1086_v9 = vld [vmem:[%s1636_s1 + $0xf4] sm:$0xf]  ;;  %v858_v10 = vld [vmem:[%s1636_s1 + $0xf8] sm:$0xf0]  ;;  %v784_v11 = vld [vmem:[%s1636_s1 + $0x60] sm:$0xf] }
   0x4   :  { %236 = vmatpush.bf16.msra.mxu0 %v793_v3  ;;  %v861_v12 = vor.u32 %v1086_v9, %v858_v10  ;;  %v1069_v13 = vld [vmem:[%s1636_s1 + $0x64] sm:$0xf0]  ;;  %v848_v14 = vld [vmem:[%s1636_s1 + $0xe0] sm:$0xf]  ;;  %v1068_v18 = vld [vmem:[%s1636_s1 + $0x64] sm:$0xf] }
   0x5   :  { %v1085_v15 = vld [vmem:[%s1636_s1 + $0xe4] sm:$0xf0]  ;;  %250 = vmatpush.bf16.msra.mxu1 %v857_v7  ;;  %264 = vmatpush.bf16.msra.mxu2 %v797_v8  ;;  %v785_v16 = vor.u32 %v1069_v13, %v784_v11  ;;  %v786_v19 = vld [vmem:[%s1636_s1 + $0x68] sm:$0xf0]  ;;  %v1084_v20 = vld [vmem:[%s1636_s1 + $0xe4] sm:$0xf] }
   0x6   :  { %v849_v17 = vor.u32 %v1085_v15, %v848_v14  ;;  %278 = vmatpush.bf16.msra.mxu3 %v861_v12  ;;  %v789_v21 = vor.u32 %v1068_v18, %v786_v19  ;;  %v850_v22 = vld [vmem:[%s1636_s1 + $0xe8] sm:$0xf0]  ;;  %v776_v23 = vld [vmem:[%s1636_s1 + $0x50] sm:$0xf]  ;;  %v1067_v24 = vld [vmem:[%s1636_s1 + $0x54] sm:$0xf0] }
   0x7   :  { %v853_v25 = vor.u32 %v1084_v20, %v850_v22  ;;  %v840_v26 = vld [vmem:[%s1636_s1 + $0xd0] sm:$0xf]  ;;  %v1083_v27 = vld [vmem:[%s1636_s1 + $0xd4] sm:$0xf0]  ;;  %v1066_v28 = vld [vmem:[%s1636_s1 + $0x54] sm:$0xf]  ;;  %v777_v29 = vor.u32 %v1067_v24, %v776_v23 }
   0x8   :  { %237 = vmatpush.bf16.msra.mxu0 %v785_v16  ;;  %v778_v30 = vld [vmem:[%s1636_s1 + $0x58] sm:$0xf0]  ;;  %v1082_v31 = vld [vmem:[%s1636_s1 + $0xd4] sm:$0xf]  ;;  %v841_v33 = vor.u32 %v1083_v27, %v840_v26  ;;  %v768_v35 = vld [vmem:[%s1636_s1 + $0x40] sm:$0xf] }
   0x9   :  { %v842_v32 = vld [vmem:[%s1636_s1 + $0xd8] sm:$0xf0]  ;;  %251 = vmatpush.bf16.msra.mxu1 %v849_v17  ;;  %265 = vmatpush.bf16.msra.mxu2 %v789_v21  ;;  %v781_v34 = vor.u32 %v1066_v28, %v778_v30  ;;  %v1065_v36 = vld [vmem:[%s1636_s1 + $0x44] sm:$0xf0]  ;;  %v832_v37 = vld [vmem:[%s1636_s1 + $0xc0] sm:$0xf] }
   0xa   :  { %279 = vmatpush.bf16.msra.mxu3 %v853_v25  ;;  %v845_v38 = vor.u32 %v1082_v31, %v842_v32  ;;  %v1081_v39 = vld [vmem:[%s1636_s1 + $0xc4] sm:$0xf0]  ;;  %v1064_v40 = vld [vmem:[%s1636_s1 + $0x44] sm:$0xf]  ;;  %v770_v41 = vld [vmem:[%s1636_s1 + $0x48] sm:$0xf0]  ;;  %v769_v44 = vor.u32 %v1065_v36, %v768_v35 }
   0xb   :  { %v1080_v42 = vld [vmem:[%s1636_s1 + $0xc4] sm:$0xf]  ;;  %v834_v43 = vld [vmem:[%s1636_s1 + $0xc8] sm:$0xf0]  ;;  %v833_v45 = vor.u32 %v1081_v39, %v832_v37  ;;  %v773_v46 = vor.u32 %v1064_v40, %v770_v41  ;;  %v760_v47 = vld [vmem:[%s1636_s1 + $0x30] sm:$0xf] }
   0xc   :  { %238 = vmatpush.bf16.msra.mxu0 %v777_v29  ;;  %v1063_v48 = vld [vmem:[%s1636_s1 + $0x34] sm:$0xf0]  ;;  %v824_v49 = vld [vmem:[%s1636_s1 + $0xb0] sm:$0xf]  ;;  %v837_v50 = vor.u32 %v1080_v42, %v834_v43  ;;  %v1062_v52 = vld [vmem:[%s1636_s1 + $0x34] sm:$0xf] }
   0xd   :  { %252 = vmatpush.bf16.msra.mxu1 %v841_v33  ;;  %266 = vmatpush.bf16.msra.mxu2 %v781_v34  ;;  %v1079_v51 = vld [vmem:[%s1636_s1 + $0xb4] sm:$0xf0]  ;;  %v762_v53 = vld [vmem:[%s1636_s1 + $0x38] sm:$0xf0]  ;;  %v1078_v54 = vld [vmem:[%s1636_s1 + $0xb4] sm:$0xf]  ;;  %v761_v56 = vor.u32 %v1063_v48, %v760_v47 }
   0xe   :  { %280 = vmatpush.bf16.msra.mxu3 %v845_v38  ;;  %v826_v55 = vld [vmem:[%s1636_s1 + $0xb8] sm:$0xf0]  ;;  %v825_v57 = vor.u32 %v1079_v51, %v824_v49  ;;  %v765_v58 = vor.u32 %v1062_v52, %v762_v53  ;;  %v752_v59 = vld [vmem:[%s1636_s1 + $0x20] sm:$0xf]  ;;  %v1061_v60 = vld [vmem:[%s1636_s1 + $0x24] sm:$0xf0] }
   0xf   :  { %v816_v61 = vld [vmem:[%s1636_s1 + $0xa0] sm:$0xf]  ;;  %v829_v62 = vor.u32 %v1078_v54, %v826_v55  ;;  %v1077_v63 = vld [vmem:[%s1636_s1 + $0xa4] sm:$0xf0]  ;;  %v1060_v0 = vld [vmem:[%s1636_s1 + $0x24] sm:$0xf]  ;;  %v753_v4 = vor.u32 %v1061_v60, %v752_v59 }
  0x10   :  { %239 = vmatpush.bf16.msra.mxu0 %v769_v44  ;;  %v754_v1 = vld [vmem:[%s1636_s1 + $0x28] sm:$0xf0]  ;;  %v1076_v2 = vld [vmem:[%s1636_s1 + $0xa4] sm:$0xf]  ;;  %v817_v5 = vor.u32 %v1077_v63, %v816_v61  ;;  %v744_v7 = vld [vmem:[%s1636_s1 + $0x10] sm:$0xf] }
  0x11   :  { %253 = vmatpush.bf16.msra.mxu1 %v833_v45  ;;  %267 = vmatpush.bf16.msra.mxu2 %v773_v46  ;;  %v818_v3 = vld [vmem:[%s1636_s1 + $0xa8] sm:$0xf0]  ;;  %v757_v6 = vor.u32 %v1060_v0, %v754_v1  ;;  %v1059_v8 = vld [vmem:[%s1636_s1 + $0x14] sm:$0xf0]  ;;  %v808_v9 = vld [vmem:[%s1636_s1 + $0x90] sm:$0xf] }
  0x12   :  { %281 = vmatpush.bf16.msra.mxu3 %v837_v50  ;;  %v821_v10 = vor.u32 %v1076_v2, %v818_v3  ;;  %v1075_v11 = vld [vmem:[%s1636_s1 + $0x94] sm:$0xf0]  ;;  %v1058_v12 = vld [vmem:[%s1636_s1 + $0x14] sm:$0xf]  ;;  %v746_v13 = vld [vmem:[%s1636_s1 + $0x18] sm:$0xf0]  ;;  %v745_v16 = vor.u32 %v1059_v8, %v744_v7 }
  0x13   :  { %v1074_v14 = vld [vmem:[%s1636_s1 + $0x94] sm:$0xf]  ;;  %v810_v15 = vld [vmem:[%s1636_s1 + $0x98] sm:$0xf0]  ;;  %v736_v17 = vld [vmem:[%s1636_s1] sm:$0xf]  ;;  %v809_v19 = vor.u32 %v1075_v11, %v808_v9  ;;  %v749_v20 = vor.u32 %v1058_v12, %v746_v13 }
  0x14   :  { %240 = vmatpush.bf16.msra.mxu0 %v761_v56  ;;  %v1057_v18 = vld [vmem:[%s1636_s1 + $0x4] sm:$0xf0]  ;;  %v800_v21 = vld [vmem:[%s1636_s1 + $0x80] sm:$0xf]  ;;  %v1056_v23 = vld [vmem:[%s1636_s1 + $0x4] sm:$0xf]  ;;  %v813_v24 = vor.u32 %v1074_v14, %v810_v15 }
  0x15   :  { %254 = vmatpush.bf16.msra.mxu1 %v825_v57  ;;  %268 = vmatpush.bf16.msra.mxu2 %v765_v58  ;;  %v1073_v22 = vld [vmem:[%s1636_s1 + $0x84] sm:$0xf0]  ;;  %v738_v25 = vld [vmem:[%s1636_s1 + $0x8] sm:$0xf0]  ;;  %v1072_v26 = vld [vmem:[%s1636_s1 + $0x84] sm:$0xf]  ;;  %v737_v31 = vor.u32 %v1057_v18, %v736_v17 }
  0x16   :  { %282 = vmatpush.bf16.msra.mxu3 %v829_v62  ;;  %v802_v27 = vld [vmem:[%s1636_s1 + $0x88] sm:$0xf0]  ;;  %v728_v28 = vld [vmem:[%s1637_s0] sm:$0xf]  ;;  %v920_v29 = vld [vmem:[%s1638_s3 + $0x70] sm:$0xf]  ;;  %v801_v35 = vor.u32 %v1073_v22, %v800_v21  ;;  %v741_v36 = vor.u32 %v1056_v23, %v738_v25 }
  0x17   :  { %v1103_v30 = vld [vmem:[%s1638_s3 + $0x74] sm:$0xf0]  ;;  %v1055_v32 = vld [vmem:[%s1637_s0 + $0x4] sm:$0xf0]  ;;  %v1102_v33 = vld [vmem:[%s1638_s3 + $0x74] sm:$0xf]  ;;  %v805_v39 = vor.u32 %v1072_v26, %v802_v27 }
  0x18   :  { %241 = vmatpush.bf16.msra.mxu0 %v753_v4  ;;  %v922_v34 = vld [vmem:[%s1638_s3 + $0x78] sm:$0xf0]  ;;  %v1054_v37 = vld [vmem:[%s1637_s0 + $0x4] sm:$0xf]  ;;  %v730_v38 = vld [vmem:[%s1637_s0 + $0x8] sm:$0xf0]  ;;  %v921_v40 = vor.u32 %v1103_v30, %v920_v29  ;;  %v729_v44 = vor.u32 %v1055_v32, %v728_v28 }
  0x19   :  { %255 = vmatpush.bf16.msra.mxu1 %v817_v5  ;;  %269 = vmatpush.bf16.msra.mxu2 %v757_v6  ;;  %v912_v41 = vld [vmem:[%s1638_s3 + $0x60] sm:$0xf]  ;;  %v984_v42 = vld [vmem:[%s1638_s3 + $0xf0] sm:$0xf]  ;;  %v1119_v43 = vld [vmem:[%s1638_s3 + $0xf4] sm:$0xf0]  ;;  %v925_v45 = vor.u32 %v1102_v33, %v922_v34  ;;  %v733_v49 = vor.u32 %v1054_v37, %v730_v38 }
  0x1a   :  { %283 = vmatpush.bf16.msra.mxu3 %v821_v10  ;;  %v1101_v46 = vld [vmem:[%s1638_s3 + $0x64] sm:$0xf0]  ;;  %v1118_v47 = vld [vmem:[%s1638_s3 + $0xf4] sm:$0xf]  ;;  %v986_v48 = vld [vmem:[%s1638_s3 + $0xf8] sm:$0xf0]  ;;  %v985_v52 = vor.u32 %v1119_v43, %v984_v42 }
  0x1b   :  { %v1100_v50 = vld [vmem:[%s1638_s3 + $0x64] sm:$0xf]  ;;  %v914_v51 = vld [vmem:[%s1638_s3 + $0x68] sm:$0xf0]  ;;  %v913_v53 = vor.u32 %v1101_v46, %v912_v41  ;;  %v989_v54 = vor.u32 %v1118_v47, %v986_v48  ;;  %v904_v55 = vld [vmem:[%s1638_s3 + $0x50] sm:$0xf] }
  0x1c   :  { %242 = vmatpush.bf16.msra.mxu0 %v745_v16  ;;  %v976_v56 = vld [vmem:[%s1638_s3 + $0xe0] sm:$0xf]  ;;  %v1117_v57 = vld [vmem:[%s1638_s3 + $0xe4] sm:$0xf0]  ;;  %v917_v58 = vor.u32 %v1100_v50, %v914_v51  ;;  %v1099_v59 = vld [vmem:[%s1638_s3 + $0x54] sm:$0xf0] }
  0x1d   :  { %256 = vmatpush.bf16.msra.mxu1 %v809_v19  ;;  %270 = vmatpush.bf16.msra.mxu2 %v749_v20  ;;  %v1116_v60 = vld [vmem:[%s1638_s3 + $0xe4] sm:$0xf]  ;;  %v978_v61 = vld [vmem:[%s1638_s3 + $0xe8] sm:$0xf0]  ;;  %v1098_v62 = vld [vmem:[%s1638_s3 + $0x54] sm:$0xf]  ;;  %v977_v0 = vor.u32 %v1117_v57, %v976_v56  ;;  %v905_v1 = vor.u32 %v1099_v59, %v904_v55 }
  0x1e   :  { %284 = vmatpush.bf16.msra.mxu3 %v813_v24  ;;  %v906_v63 = vld [vmem:[%s1638_s3 + $0x58] sm:$0xf0]  ;;  %v981_v2 = vor.u32 %v1116_v60, %v978_v61  ;;  %v896_v4 = vld [vmem:[%s1638_s3 + $0x40] sm:$0xf]  ;;  %v1097_v5 = vld [vmem:[%s1638_s3 + $0x44] sm:$0xf0] }
  0x1f   :  { %v909_v3 = vor.u32 %v1098_v62, %v906_v63  ;;  %v1096_v6 = vld [vmem:[%s1638_s3 + $0x44] sm:$0xf]  ;;  %v898_v7 = vld [vmem:[%s1638_s3 + $0x48] sm:$0xf0]  ;;  %v897_v8 = vor.u32 %v1097_v5, %v896_v4  ;;  %v968_v10 = vld [vmem:[%s1638_s3 + $0xd0] sm:$0xf] }
  0x20   :  { %243 = vmatpush.bf16.msra.mxu0 %v737_v31  ;;  %v901_v9 = vor.u32 %v1096_v6, %v898_v7  ;;  %v1115_v11 = vld [vmem:[%s1638_s3 + $0xd4] sm:$0xf0]  ;;  %v1114_v12 = vld [vmem:[%s1638_s3 + $0xd4] sm:$0xf]  ;;  %v970_v14 = vld [vmem:[%s1638_s3 + $0xd8] sm:$0xf0] }
  0x21   :  { %257 = vmatpush.bf16.msra.mxu1 %v801_v35  ;;  %271 = vmatpush.bf16.msra.mxu2 %v741_v36  ;;  %v969_v13 = vor.u32 %v1115_v11, %v968_v10  ;;  %v973_v15 = vor.u32 %v1114_v12, %v970_v14  ;;  %v888_v16 = vld [vmem:[%s1638_s3 + $0x30] sm:$0xf]  ;;  %v1095_v17 = vld [vmem:[%s1638_s3 + $0x34] sm:$0xf0]  ;;  %v1094_v18 = vld [vmem:[%s1638_s3 + $0x34] sm:$0xf] }
  0x22   :  { %285 = vmatpush.bf16.msra.mxu3 %v805_v39  ;;  %v889_v19 = vor.u32 %v1095_v17, %v888_v16  ;;  %v890_v20 = vld [vmem:[%s1638_s3 + $0x38] sm:$0xf0]  ;;  %v960_v22 = vld [vmem:[%s1638_s3 + $0xc0] sm:$0xf]  ;;  %v1113_v23 = vld [vmem:[%s1638_s3 + $0xc4] sm:$0xf0] }
  0x23   :  { %244 = vmatmul.bf16.vlgmr.msra.gmra.mxu0 %v729_v44  ;;  %v893_v21 = vor.u32 %v1094_v18, %v890_v20  ;;  %v1112_v24 = vld [vmem:[%s1638_s3 + $0xc4] sm:$0xf]  ;;  %v961_v25 = vor.u32 %v1113_v23, %v960_v22  ;;  %v962_v26 = vld [vmem:[%s1638_s3 + $0xc8] sm:$0xf0]  ;;  %v880_v28 = vld [vmem:[%s1638_s3 + $0x20] sm:$0xf] }
  0x24   :  { %496 = vmatpush.bf16.msrb.mxu0 %v921_v40  ;;  %258 = vmatmul.bf16.vlgmr.msra.gmra.mxu1 %v733_v49  ;;  %v965_v27 = vor.u32 %v1112_v24, %v962_v26  ;;  %v1093_v29 = vld [vmem:[%s1638_s3 + $0x24] sm:$0xf0]  ;;  %v1092_v31 = vld [vmem:[%s1638_s3 + $0x24] sm:$0xf]  ;;  %v882_v32 = vld [vmem:[%s1638_s3 + $0x28] sm:$0xf0] }
  0x25   :  { %524 = vmatpush.bf16.msrb.mxu2 %v925_v45  ;;  %286 = vmatmul.bf16.vlgmr.msra.gmra.mxu3 %v733_v49  ;;  %v881_v30 = vor.u32 %v1093_v29, %v880_v28  ;;  %v885_v33 = vor.u32 %v1092_v31, %v882_v32  ;;  %v952_v34 = vld [vmem:[%s1638_s3 + $0xb0] sm:$0xf]  ;;  %v1111_v35 = vld [vmem:[%s1638_s3 + $0xb4] sm:$0xf0]  ;;  %v1110_v36 = vld [vmem:[%s1638_s3 + $0xb4] sm:$0xf] }
  0x26   :  { %272 = vmatmul.bf16.vlgmr.msra.gmra.mxu2 %v729_v44  ;;  %510 = vmatpush.bf16.msrb.mxu1 %v985_v52  ;;  %v953_v37 = vor.u32 %v1111_v35, %v952_v34  ;;  %v954_v38 = vld [vmem:[%s1638_s3 + $0xb8] sm:$0xf0]  ;;  %v872_v40 = vld [vmem:[%s1638_s3 + $0x10] sm:$0xf]  ;;  %v1091_v41 = vld [vmem:[%s1638_s3 + $0x14] sm:$0xf0] }
  0x27   :  { %538 = vmatpush.bf16.msrb.mxu3 %v989_v54  ;;  %v957_v39 = vor.u32 %v1110_v36, %v954_v38  ;;  %v1090_v42 = vld [vmem:[%s1638_s3 + $0x14] sm:$0xf]  ;;  %v873_v43 = vor.u32 %v1091_v41, %v872_v40  ;;  %v874_v44 = vld [vmem:[%s1638_s3 + $0x18] sm:$0xf0]  ;;  %v944_v46 = vld [vmem:[%s1638_s3 + $0xa0] sm:$0xf] }
  0x28   :  { %497 = vmatpush.bf16.msrb.mxu0 %v913_v53  ;;  %v877_v45 = vor.u32 %v1090_v42, %v874_v44  ;;  %v1109_v47 = vld [vmem:[%s1638_s3 + $0xa4] sm:$0xf0]  ;;  %v1108_v48 = vld [vmem:[%s1638_s3 + $0xa4] sm:$0xf]  ;;  %v946_v50 = vld [vmem:[%s1638_s3 + $0xa8] sm:$0xf0] }
  0x29   :  { %525 = vmatpush.bf16.msrb.mxu2 %v917_v58  ;;  %v945_v49 = vor.u32 %v1109_v47, %v944_v46  ;;  %v949_v51 = vor.u32 %v1108_v48, %v946_v50  ;;  %v864_v52 = vld [vmem:[%s1638_s3] sm:$0xf]  ;;  %v1089_v53 = vld [vmem:[%s1638_s3 + $0x4] sm:$0xf0]  ;;  %v1088_v54 = vld [vmem:[%s1638_s3 + $0x4] sm:$0xf] }
  0x2a   :  { %511 = vmatpush.bf16.msrb.mxu1 %v977_v0  ;;  %v865_v55 = vor.u32 %v1089_v53, %v864_v52  ;;  %v866_v56 = vld [vmem:[%s1638_s3 + $0x8] sm:$0xf0]  ;;  %v936_v58 = vld [vmem:[%s1638_s3 + $0x90] sm:$0xf]  ;;  %v1107_v59 = vld [vmem:[%s1638_s3 + $0x94] sm:$0xf0] }
  0x2b   :  { %539 = vmatpush.bf16.msrb.mxu3 %v981_v2  ;;  %v869_v57 = vor.u32 %v1088_v54, %v866_v56  ;;  %v1106_v60 = vld [vmem:[%s1638_s3 + $0x94] sm:$0xf]  ;;  %v937_v61 = vor.u32 %v1107_v59, %v936_v58  ;;  %v938_v62 = vld [vmem:[%s1638_s3 + $0x98] sm:$0xf0]  ;;  %v928_v0 = vld [vmem:[%s1638_s3 + $0x80] sm:$0xf] }
  0x2c   :  { %498 = vmatpush.bf16.msrb.mxu0 %v905_v1  ;;  %v941_v63 = vor.u32 %v1106_v60, %v938_v62  ;;  %v1105_v1 = vld [vmem:[%s1638_s3 + $0x84] sm:$0xf0]  ;;  %v1104_v2 = vld [vmem:[%s1638_s3 + $0x84] sm:$0xf]  ;;  %v930_v4 = vld [vmem:[%s1638_s3 + $0x88] sm:$0xf0] }
  0x2d   :  { %526 = vmatpush.bf16.msrb.mxu2 %v909_v3  ;;  %v929_v3 = vor.u32 %v1105_v1, %v928_v0  ;;  %v933_v5 = vor.u32 %v1104_v2, %v930_v4  ;;  %v1127_v6 = vld [vmem:[%s1639_s5 + $0x38] sm:$0xff]  ;;  %v1125_v10 = vld [vmem:[%s1639_s5 + $0x28] sm:$0xff]  ;;  %v1134_v35 = vld [vmem:[%s1639_s5 + $0x70] sm:$0xff] }
  0x2e   :  { %512 = vmatpush.bf16.msrb.mxu1 %v969_v13  ;;  %v1135_v7 = vld [vmem:[%s1639_s5 + $0x78] sm:$0xff]  ;;  %v1124_v36 = vld [vmem:[%s1639_s5 + $0x20] sm:$0xff]  ;;  %v1122_v40 = vld [vmem:[%s1639_s5 + $0x10] sm:$0xff] }
  0x2f   :  { %540 = vmatpush.bf16.msrb.mxu3 %v973_v15  ;;  %v1123_v38 = vld [vmem:[%s1639_s5 + $0x18] sm:$0xff]  ;;  %v1121_v42 = vld [vmem:[%s1639_s5 + $0x8] sm:$0xff]  ;;  %v1120_v44 = vld [vmem:[%s1639_s5] sm:$0xff] }
  0x30   :  { %499 = vmatpush.bf16.msrb.mxu0 %v897_v8  ;;  %v1126_v8 = vld [vmem:[%s1639_s5 + $0x30] sm:$0xff]  ;;  %v1131_v41 = vld [vmem:[%s1639_s5 + $0x58] sm:$0xff]  ;;  %v1128_v46 = vld [vmem:[%s1639_s5 + $0x40] sm:$0xff] }
  0x31   :  { %527 = vmatpush.bf16.msrb.mxu2 %v901_v9  ;;  %v60_v9 = vld [vmem:[%s1640_s2] sm:$0x3] }
  0x32   :  { %513 = vmatpush.bf16.msrb.mxu1 %v961_v25  ;;  %v62_v12 = vperm.slane %v60_v9, 0  ;;  %v63_v16 = vperm.slane %v60_v9, 1  ;;  %v330_v48 = vld [vmem:[%s1642_s4] sm:$0x3] }
  0x33   :  { %541 = vmatpush.bf16.msrb.mxu3 %v965_v27  ;;  %v333_v56 = vperm.slane %v330_v48, 1  ;;  %v1136_v9 = vld [vmem:[%s1641_s6] ss:$0 sm:$0xff] }
  0x34   :  { %500 = vmatpush.bf16.msrb.mxu0 %v889_v19 }
  0x35   :  { %528 = vmatpush.bf16.msrb.mxu2 %v893_v21 }
  0x36   :  { %514 = vmatpush.bf16.msrb.mxu1 %v953_v37  ;;  %v1133_v37 = vld [vmem:[%s1639_s5 + $0x68] sm:$0xff] }
  0x37   :  { %542 = vmatpush.bf16.msrb.mxu3 %v957_v39  ;;  %v1132_v39 = vld [vmem:[%s1639_s5 + $0x60] sm:$0xff] }
  0x38   :  { %501 = vmatpush.bf16.msrb.mxu0 %v881_v30 }
  0x39   :  { %529 = vmatpush.bf16.msrb.mxu2 %v885_v33 }
  0x3a   :  { %515 = vmatpush.bf16.msrb.mxu1 %v945_v49 }
  0x3b   :  { %543 = vmatpush.bf16.msrb.mxu3 %v949_v51  ;;  %v332_v51 = vperm.slane %v330_v48, 0 }
  0x3c   :  { %502 = vmatpush.bf16.msrb.mxu0 %v873_v43  ;;  %v1130_v43 = vld [vmem:[%s1639_s5 + $0x50] sm:$0xff] }
  0x3d   :  { %530 = vmatpush.bf16.msrb.mxu2 %v877_v45  ;;  %v1129_v45 = vld [vmem:[%s1639_s5 + $0x48] sm:$0xff] }
  0x3e   :  { %516 = vmatpush.bf16.msrb.mxu1 %v937_v61 }
  0x3f   :  { %544 = vmatpush.bf16.msrb.mxu3 %v941_v63 }
  0x40   :  { %503 = vmatpush.bf16.msrb.mxu0 %v865_v55 }
  0x41   :  { %531 = vmatpush.bf16.msrb.mxu2 %v869_v57 }
  0x42   :  { %517 = vmatpush.bf16.msrb.mxu1 %v929_v3 }
  0x43   :  { %545 = vmatpush.bf16.msrb.mxu3 %v933_v5 }
  0x44   :  { %690 = vmatpush.bf16.msra.mxu0 %v1127_v6 }
  0x46   :  { %704 = vmatpush.bf16.msra.mxu1 %v1135_v7 }
  0x48   :  { %691 = vmatpush.bf16.msra.mxu0 %v1126_v8 }
  0x4a   :  { %705 = vmatpush.bf16.msra.mxu1 %v1134_v35 }
  0x4c   :  { %692 = vmatpush.bf16.msra.mxu0 %v1125_v10 }
  0x4e   :  { %706 = vmatpush.bf16.msra.mxu1 %v1133_v37 }
  0x50   :  { %693 = vmatpush.bf16.msra.mxu0 %v1124_v36 }
  0x52   :  { %707 = vmatpush.bf16.msra.mxu1 %v1132_v39 }
  0x54   :  { %694 = vmatpush.bf16.msra.mxu0 %v1123_v38 }
  0x56   :  { %708 = vmatpush.bf16.msra.mxu1 %v1131_v41 }
  0x58   :  { %695 = vmatpush.bf16.msra.mxu0 %v1122_v40 }
  0x5a   :  { %709 = vmatpush.bf16.msra.mxu1 %v1130_v43 }
  0x5c   :  { %696 = vmatpush.bf16.msra.mxu0 %v1121_v42 }
  0x5e   :  { %710 = vmatpush.bf16.msra.mxu1 %v1129_v45 }
  0x60   :  { %697 = vmatpush.bf16.msra.mxu0 %v1120_v44 }
  0x62   :  { %711 = vmatpush.bf16.msra.mxu1 %v1128_v46 }
  0xa0   :  { %v245_v11 = vpop.f32.mrf.mxu0 }
  0xa1   :  { %v259_v13 = vpop.f32.mrf.mxu1  ;;  %v246_v14 = vadd.f32 %v245_v11, %v62_v12 }
  0xa3   :  { %v260_v19 = vadd.f32 %v259_v13, %v246_v14 }
  0xa5   :  { %v292_v24 = vmax.f32 %v260_v19, 0.0 }
  0xa8   :  { %v287_v17 = vpop.f32.mrf.mxu3  ;;  %v247_v18 = vpop.f32.mrf.mxu0 }
  0xa9   :  { %v273_v15 = vpop.f32.mrf.mxu2  ;;  %v248_v20 = vadd.f32 %v247_v18, %v62_v12  ;;  %v261_v21 = vpop.f32.mrf.mxu1 }
  0xaa   :  { %v274_v23 = vadd.f32 %v273_v15, %v63_v16 }
  0xab   :  { %v262_v22 = vadd.f32 %v261_v21, %v248_v20 }
  0xac   :  { %v288_v28 = vadd.f32 %v287_v17, %v274_v23 }
  0xad   :  { %v294_v25 = vmax.f32 %v262_v22, 0.0 }
  0xae   :  { %v293_v32 = vmax.f32 %v288_v28, 0.0 }
  0xaf   :  { %v296_v26 = vpack.c.bf16 %v294_v25, %v292_v24 }
  0xb0   :  { %v289_v30 = vpop.f32.mrf.mxu3 }
  0xb1   :  { %v275_v27 = vpop.f32.mrf.mxu2  ;;  %504 = vmatmul.bf16.vlgmr.msrb.gmra.mxu0 %v296_v26  ;;  %532 = vmatmul.bf16.vlgmr.msrb.gmra.mxu2 %v296_v26 }
  0xb2   :  { %v276_v29 = vadd.f32 %v275_v27, %v63_v16 }
  0xb4   :  { %v290_v31 = vadd.f32 %v289_v30, %v276_v29 }
  0xb6   :  { %v295_v33 = vmax.f32 %v290_v31, 0.0 }
  0xb8   :  { %v297_v34 = vpack.c.bf16 %v295_v33, %v293_v32 }
  0xba   :  { %518 = vmatmul.bf16.vlgmr.msrb.gmra.mxu1 %v297_v34  ;;  %546 = vmatmul.bf16.vlgmr.msrb.gmra.mxu3 %v297_v34 }
 0x12e   :  { %v505_v47 = vpop.f32.mrf.mxu0 }
 0x12f   :  { %v506_v53 = vadd.f32 %v505_v47, %v332_v51 }
 0x134   :  { %v533_v50 = vpop.f32.mrf.mxu2 }
 0x135   :  { %v534_v62 = vadd.f32 %v533_v50, %v333_v56 }
 0x136   :  { %v507_v52 = vpop.f32.mrf.mxu0 }
 0x137   :  { %v519_v49 = vpop.f32.mrf.mxu1  ;;  %v508_v57 = vadd.f32 %v507_v52, %v332_v51 }
 0x138   :  { %v520_v55 = vadd.f32 %v519_v49, %v506_v53 }
 0x13a   :  { %v552_v61 = vmax.f32 %v520_v55, 0.0 }
 0x13c   :  { %v535_v60 = vpop.f32.mrf.mxu2 }
 0x13d   :  { %v547_v54 = vpop.f32.mrf.mxu3  ;;  %v536_v2 = vadd.f32 %v535_v60, %v333_v56 }
 0x13e   :  { %v548_v0 = vadd.f32 %v547_v54, %v534_v62 }
 0x13f   :  { %v521_v58 = vpop.f32.mrf.mxu1 }
 0x140   :  { %v522_v59 = vadd.f32 %v521_v58, %v508_v57  ;;  %v553_v5 = vmax.f32 %v548_v0, 0.0 }
 0x142   :  { %v554_v63 = vmax.f32 %v522_v59, 0.0 }
 0x144   :  { %v556_v1 = vpack.c.bf16 %v554_v63, %v552_v61 }
 0x145   :  { %v549_v3 = vpop.f32.mrf.mxu3 }
 0x146   :  { %v550_v4 = vadd.f32 %v549_v3, %v536_v2  ;;  %698 = vmatmul.bf16.vlgmr.msra.gmra.mxu0 %v556_v1 }
 0x148   :  { %v555_v6 = vmax.f32 %v550_v4, 0.0 }
 0x14a   :  { %v557_v7 = vpack.c.bf16 %v555_v6, %v553_v5 }
 0x14c   :  { %712 = vmatmul.bf16.vlgmr.msra.gmra.mxu1 %v557_v7 }
 0x1c3   :  { %v699_v8 = vpop.f32.mrf.mxu0 }
 0x1c4   :  { %v700_v10 = vadd.f32 %v1136_v9, %v699_v8 }
 0x1c9   :  { %v713_v11 = vpop.f32.mrf.mxu1 }
 0x1ca   :  { %v714_v12 = vadd.f32 %v713_v11, %v700_v10 }
 0x1cb   :  { %v701_v14 = vpop.f32.mrf.mxu0 }
 0x1cc   :  { %v718_v13 = vmax.f32 %v714_v12, 0.0  ;;  %v702_v15 = vadd.f32 %v1136_v9, %v701_v14 }
 0x1ce   :  { %720 = vst [vmem:[%s1643_s7] sm:$0xff] %v718_v13 }
 0x1d1   :  { %v715_v16 = vpop.f32.mrf.mxu1 }
 0x1d2   :  { %v716_v17 = vadd.f32 %v715_v16, %v702_v15 }
 0x1d4   :  { %v719_v18 = vmax.f32 %v716_v17, 0.0 }
 0x1d6   :  { %721 = vst [vmem:[%s1643_s7 + $0x8] sm:$0xff] %v719_v18 }

</bundles_post_ra>
